<compile_context>
chip_gen: v5e
topology: v5e:2x2
jax: 0.10.0
libtpu: 0.0.40
codegen_flags: <defaults>
</compile_context>

<pallas_src>
import numpy as np
import jax
import jax.numpy as jnp
from jax.experimental import pallas as pl
from jax.experimental.pallas import tpu as pltpu  # noqa: F401  (TPU backend import)

# ----------------------------- example config (small) -----------------------------
B = 2          # batch
S = 8          # target sequence length
M = 8          # memory sequence length
D = 32         # d_model
NHEAD = 4
EPS = 1e-5     # layer_norm_eps


# ----------------------------- Pallas kernel -----------------------------
def _make_kernel(batch, seq, mem_len, d_model, nhead, eps):
    d2 = 2 * d_model
    bs = batch * seq
    bm = batch * mem_len
    bhm = batch * nhead * mem_len

    def kernel(xf_ref, memf_ref, t_ref, wb_ref, msk_ref, o_ref):
        xf = xf_ref[...]          # (B*S, D)
        memf = memf_ref[...]      # (B*M, D)
        tt = t_ref[...]           # (B, D)

        # ---- packed weights/biases slab (one DMA): cols [wq' | wkv | wout | wfilm'] ----
        # biases sit in row `d_model`, in the same column ranges as their weights.
        wq = wb_ref[0:d_model, 0:d_model]                                     # LN affine + 1/sqrt(hd) folded
        wkv = wb_ref[0:d_model, d_model:d_model + d2]
        wout = wb_ref[0:d_model, d_model + d2:2 * d_model + d2]
        wfilm = wb_ref[0:d_model, 2 * d_model + d2:2 * d_model + 2 * d2]
        bq = wb_ref[d_model:d_model + 1, 0:d_model]
        bkv = wb_ref[d_model:d_model + 1, d_model:d_model + d2]
        bout = wb_ref[d_model:d_model + 1, d_model + d2:2 * d_model + d2]
        bfilm = wb_ref[d_model:d_model + 1, 2 * d_model + d2:2 * d_model + 2 * d2]

        # ---- packed constant-mask slab (one DMA), built host-side ----
        hm2 = msk_ref[0:bhm, 0:d2]                        # (BHM, 2D) head-feature mask for K|V
        seg = msk_ref[0:bhm, d2:d2 + bhm]                 # (BHM, BHM) same-(batch,head)-block indicator
        rep = msk_ref[0:bhm, d2 + bhm:d2 + bhm + bm]      # (BHM, BM)  row-replication matrix
        addm = msk_ref[bhm:bhm + bs, 0:bhm]               # (BS, BHM)  0 / -1e30 cross-batch mask
        oneh = msk_ref[bhm + bs:bhm + 2 * bs, 0:batch]    # (BS, B)    per-batch one-hot

        # ---- LayerNorm (norm2); affine folded into the Q projection wrapper-side ----
        mu = jnp.mean(xf, axis=-1, keepdims=True)
        xc = xf - mu
        var = jnp.mean(xc * xc, axis=-1, keepdims=True)
        xhat = xc * jax.lax.rsqrt(var + eps)

        # ---- projections (LN affine + attention scale pre-folded into wq/bq) ----
        q = jnp.dot(xhat, wq, preferred_element_type=jnp.float32) + bq          # (B*S, D)
        kv = jnp.dot(memf, wkv, preferred_element_type=jnp.float32) + bkv       # (B*M, 2D)

        # Block-diagonal-over-(batch, head) K and V: one replication matmul + one mask multiply.
        kvbd = jnp.dot(rep, kv, preferred_element_type=jnp.float32) * hm2       # (B*H*M, 2D)
        kbd = kvbd[:, 0:d_model]
        vbd = kvbd[:, d_model:d2]

        # ---- attention: ONE scores / segmented-sum / PV matmul for the whole batch ----
        s = jax.lax.dot_general(q, kbd, (((1,), (1,)), ((), ())),
                                preferred_element_type=jnp.float32)             # (B*S, B*H*M)
        s = s + addm                                   # additive cross-batch mask (before max/exp)
        p = jnp.exp(s - jnp.max(s, axis=-1, keepdims=True))
        den = jnp.dot(p, seg, preferred_element_type=jnp.float32)               # per-(batch,head) sums
        # Clamp: cross-batch blocks have an exactly-zero denominator (masked p == 0); without the
        # clamp, approx-reciprocal gives inf and 0*inf = NaN.  Also guards per-head exp underflow
        # under the shared row max.
        p = p * pl.reciprocal(jnp.maximum(den, 1e-30), approx=True)
        o_heads = jnp.dot(p, vbd, preferred_element_type=jnp.float32)           # (B*S, D) head-concat
        attn_o = jnp.dot(o_heads, wout, preferred_element_type=jnp.float32) + bout

        # ---- DenseFiLM (film2): Mish(t) -> Linear; "+1" of featurewise_affine folded into bias ----
        sp = jnp.maximum(tt, 0.0) + jnp.log1p(jnp.exp(-jnp.abs(tt)))             # stable softplus
        mish_t = tt * jnp.tanh(sp)
        film = jnp.dot(mish_t, wfilm, preferred_element_type=jnp.float32) + bfilm  # (B, 2D)
        film_rows = jnp.dot(oneh, film, preferred_element_type=jnp.float32)        # (B*S, 2D)
        scale_rows = film_rows[:, 0:d_model]
        shift_rows = film_rows[:, d_model:d2]

        # ---- residual + FiLM affine: single elementwise pass, single store ----
        # TODO(synk): D=32 keeps this a 32-lane masked store; padding the feature dim to 128 lanes
        # wrapper-side would make it dense but complicates the LN reduction; skipped (2 KB output).
        o_ref[...] = xf + scale_rows * attn_o + shift_rows

    return kernel


# ----------------------------- wrapper -----------------------------
def film_transformer_decoder_layer2(tgt, memory, t, params, nhead=NHEAD, eps=EPS):
    """tgt: (B,S,D), memory: (B,M,D), t: (B,D). Returns (B,S,D)."""
    batch, seq, d_model = tgt.shape
    mem_len = memory.shape[1]
    assert d_model % nhead == 0
    hd = d_model // nhead
    d2 = 2 * d_model
    bs = batch * seq
    bm = batch * mem_len
    bhm = batch * nhead * mem_len
    scale = 1.0 / float(np.sqrt(hd))

    w_q, w_k, w_v = jnp.split(params["in_proj_weight"], 3, axis=0)   # each (D, D)
    b_q, b_k, b_v = jnp.split(params["in_proj_bias"], 3, axis=0)
    g = params["norm2_weight"]
    bln = params["norm2_bias"]

    # Fold LayerNorm affine and 1/sqrt(hd) into the Q projection (it is the only LN consumer).
    wq_f = (g[:, None] * w_q.T) * scale                         # (D, D)
    bq_f = ((bln @ w_q.T) + b_q) * scale                        # (D,)
    wkv_t = jnp.concatenate([w_k.T, w_v.T], axis=1)             # (D, 2D) fused K/V projection
    bkv = jnp.concatenate([b_k, b_v])                           # (2D,)
    wout_t = params["out_proj_weight"].T                        # (D, D)
    bout = params["out_proj_bias"]                              # (D,)
    wfilm_t = params["film_weight"].T                           # (D, 2D)
    bfilm = params["film_bias"].at[:d_model].add(1.0)           # bake the "+1" of the affine

    # --- pack weights + biases into ONE slab (single DMA); biases in row d_model ---
    w_row = jnp.concatenate([wq_f, wkv_t, wout_t, wfilm_t], axis=1).astype(jnp.float32)  # (D, 6D)
    b_row = jnp.concatenate([bq_f, bkv, bout, bfilm]).astype(jnp.float32)                # (6D,)
    wb_rows = ((d_model + 1 + 7) // 8) * 8
    wb = jnp.zeros((wb_rows, 6 * d_model), jnp.float32)
    wb = wb.at[:d_model, :].set(w_row)
    wb = wb.at[d_model, :].set(b_row)

    # --- constant masks, built host-side once and packed into ONE slab (single DMA) ---
    r = np.arange(bhm)
    b_of_r = r // (nhead * mem_len)
    h_of_r = (r % (nhead * mem_len)) // mem_len
    m_of_r = r % mem_len
    c = np.arange(d2)
    hm2 = (h_of_r[:, None] == ((c[None, :] % d_model) // hd)).astype(np.float32)        # (BHM, 2D)
    seg = ((r[:, None] // mem_len) == (r[None, :] // mem_len)).astype(np.float32)       # (BHM, BHM)
    rep = np.zeros((bhm, bm), np.float32)
    rep[r, b_of_r * mem_len + m_of_r] = 1.0                                              # (BHM, BM)
    i = np.arange(bs)
    addm = np.where((i[:, None] // seq) == b_of_r[None, :], 0.0, -1e30).astype(np.float32)  # (BS, BHM)
    oneh = ((i[:, None] // seq) == np.arange(batch)[None, :]).astype(np.float32)         # (BS, B)

    msk_w = d2 + bhm + bm
    msk_rows = ((bhm + 2 * bs + 7) // 8) * 8
    msk_np = np.zeros((msk_rows, msk_w), np.float32)
    msk_np[:bhm, :d2] = hm2
    msk_np[:bhm, d2:d2 + bhm] = seg
    msk_np[:bhm, d2 + bhm:d2 + bhm + bm] = rep
    msk_np[bhm:bhm + bs, :bhm] = addm
    msk_np[bhm + bs:bhm + 2 * bs, :batch] = oneh
    msk = jnp.asarray(msk_np)

    xf = tgt.reshape(bs, d_model).astype(jnp.float32)
    memf = memory.reshape(bm, d_model).astype(jnp.float32)
    tt = t.astype(jnp.float32)

    flops = int(
        8 * bs * d_model                                   # layernorm
        + 2 * bs * d_model * d_model                       # Q proj
        + 2 * bm * d_model * d2                            # fused KV proj
        + 2 * bhm * bm * d2                                # K/V replication matmul
        + 2 * bs * d_model * bhm                           # scores
        + 2 * bs * bhm * bhm                               # segmented sums
        + 2 * bs * bhm * d_model                           # PV
        + 2 * bs * d_model * d_model                       # out proj
        + 2 * batch * d_model * d2                         # FiLM
        + 2 * bs * batch * d2                              # one-hot FiLM broadcast
        + 8 * bs * d_model                                 # affine + residual
    )
    transcendentals = int(bs * bhm + 5 * batch * d_model)
    bytes_accessed = int(4 * (xf.size + memf.size + tt.size + wb.size + msk.size + bs * d_model))

    out = pl.pallas_call(
        _make_kernel(batch, seq, mem_len, d_model, nhead, eps),
        out_shape=jax.ShapeDtypeStruct((bs, d_model), jnp.float32),
        cost_estimate=pl.CostEstimate(flops=flops,
                                      transcendentals=transcendentals,
                                      bytes_accessed=bytes_accessed),
    )(xf, memf, tt, wb, msk)
    return out.reshape(batch, seq, d_model)


# ----------------------------- plain-JAX reference -----------------------------
def reference(tgt, memory, t, params, nhead=NHEAD, eps=EPS):
    batch, seq, d_model = tgt.shape
    hd = d_model // nhead

    x = tgt
    g = params["norm2_weight"]
    b = params["norm2_bias"]
    mu = jnp.mean(x, axis=-1, keepdims=True)
    var = jnp.mean((x - mu) ** 2, axis=-1, keepdims=True)
    xn = (x - mu) / jnp.sqrt(var + eps) * g + b

    Wq, Wk, Wv = jnp.split(params["in_proj_weight"], 3, axis=0)
    bq, bk, bv = jnp.split(params["in_proj_bias"], 3, axis=0)
    q = xn @ Wq.T + bq
    k = memory @ Wk.T + bk
    v = memory @ Wv.T + bv

    def split_heads(a):                       # (B, L, D) -> (B, H, L, HD)
        return a.reshape(a.shape[0], a.shape[1], nhead, hd).transpose(0, 2, 1, 3)

    qh, kh, vh = split_heads(q), split_heads(k), split_heads(v)
    s = jnp.einsum("bhqd,bhkd->bhqk", qh, kh) / jnp.sqrt(jnp.float32(hd))
    p = jax.nn.softmax(s, axis=-1)
    o = jnp.einsum("bhqk,bhkd->bhqd", p, vh)
    o = o.transpose(0, 2, 1, 3).reshape(batch, seq, d_model)
    attn_o = o @ params["out_proj_weight"].T + params["out_proj_bias"]

    mish_t = t * jnp.tanh(jax.nn.softplus(t))
    film = mish_t @ params["film_weight"].T + params["film_bias"]   # (B, 2D)
    f_scale, f_shift = jnp.split(film, 2, axis=-1)
    f_scale = f_scale[:, None, :]
    f_shift = f_shift[:, None, :]
    return x + (f_scale + 1.0) * attn_o + f_shift


# ----------------------------- main -----------------------------
if __name__ == "__main__":
    key = jax.random.PRNGKey(0)
    ks = jax.random.split(key, 12)

    tgt = jax.random.normal(ks[0], (B, S, D), jnp.float32)
    memory = jax.random.normal(ks[1], (B, M, D), jnp.float32)
    t = jax.random.normal(ks[2], (B, D), jnp.float32)

    sc = 0.1
    params = {
        "norm2_weight": jnp.ones((D,), jnp.float32) + sc * jax.random.normal(ks[3], (D,), jnp.float32),
        "norm2_bias": sc * jax.random.normal(ks[4], (D,), jnp.float32),
        "in_proj_weight": sc * jax.random.normal(ks[5], (3 * D, D), jnp.float32),
        "in_proj_bias": sc * jax.random.normal(ks[6], (3 * D,), jnp.float32),
        "out_proj_weight": sc * jax.random.normal(ks[7], (D, D), jnp.float32),
        "out_proj_bias": sc * jax.random.normal(ks[8], (D,), jnp.float32),
        "film_weight": sc * jax.random.normal(ks[9], (2 * D, D), jnp.float32),
        "film_bias": sc * jax.random.normal(ks[10], (2 * D,), jnp.float32),
    }

    out = film_transformer_decoder_layer2(tgt, memory, t, params)
    out = jax.block_until_ready(out)

    ref = jax.block_until_ready(reference(tgt, memory, t, params))
    assert out.shape == (B, S, D)
    # tolerance allows for pl.reciprocal(approx=True) in the softmax denominator
    assert np.allclose(np.asarray(out), np.asarray(ref), rtol=1e-3, atol=2e-3), \
        f"max abs err {np.max(np.abs(np.asarray(out) - np.asarray(ref)))}"

    print("KERNEL_OK")
</pallas_src>

<mosaic_0001>
module attributes {stable_mosaic.version = 11 : i64} {
  func.func @kernel(%arg0: memref<16x32xf32, #tpu.memory_space<vmem>>, %arg1: memref<16x32xf32, #tpu.memory_space<vmem>>, %arg2: memref<2x32xf32, #tpu.memory_space<vmem>>, %arg3: memref<40x192xf32, #tpu.memory_space<vmem>>, %arg4: memref<96x144xf32, #tpu.memory_space<vmem>>, %arg5: memref<16x32xf32, #tpu.memory_space<vmem>>) attributes {dimension_semantics = [], scalar_prefetch = 0 : i64, scratch_operands = 0 : i64, tpu.core_type = #tpu.core_type<tc>} {
    %c0 = arith.constant 0 : index
    %c0_0 = arith.constant 0 : index
    %0 = vector.load %arg0[%c0, %c0_0] : memref<16x32xf32, #tpu.memory_space<vmem>>, vector<16x32xf32>
    %c0_1 = arith.constant 0 : index
    %c0_2 = arith.constant 0 : index
    %1 = vector.load %arg1[%c0_1, %c0_2] : memref<16x32xf32, #tpu.memory_space<vmem>>, vector<16x32xf32>
    %c0_3 = arith.constant 0 : index
    %c0_4 = arith.constant 0 : index
    %2 = vector.load %arg2[%c0_3, %c0_4] : memref<2x32xf32, #tpu.memory_space<vmem>>, vector<2x32xf32>
    %c0_5 = arith.constant 0 : index
    %c0_6 = arith.constant 0 : index
    %3 = vector.load %arg3[%c0_5, %c0_6] : memref<40x192xf32, #tpu.memory_space<vmem>>, vector<32x32xf32>
    %c0_7 = arith.constant 0 : index
    %c32 = arith.constant 32 : index
    %4 = vector.load %arg3[%c0_7, %c32] : memref<40x192xf32, #tpu.memory_space<vmem>>, vector<32x64xf32>
    %c0_8 = arith.constant 0 : index
    %c96 = arith.constant 96 : index
    %5 = vector.load %arg3[%c0_8, %c96] : memref<40x192xf32, #tpu.memory_space<vmem>>, vector<32x32xf32>
    %c0_9 = arith.constant 0 : index
    %c128 = arith.constant 128 : index
    %6 = vector.load %arg3[%c0_9, %c128] : memref<40x192xf32, #tpu.memory_space<vmem>>, vector<32x64xf32>
    %c32_10 = arith.constant 32 : index
    %c0_11 = arith.constant 0 : index
    %7 = vector.load %arg3[%c32_10, %c0_11] : memref<40x192xf32, #tpu.memory_space<vmem>>, vector<1x32xf32>
    %c32_12 = arith.constant 32 : index
    %c32_13 = arith.constant 32 : index
    %8 = vector.load %arg3[%c32_12, %c32_13] : memref<40x192xf32, #tpu.memory_space<vmem>>, vector<1x64xf32>
    %c32_14 = arith.constant 32 : index
    %c96_15 = arith.constant 96 : index
    %9 = vector.load %arg3[%c32_14, %c96_15] : memref<40x192xf32, #tpu.memory_space<vmem>>, vector<1x32xf32>
    %c32_16 = arith.constant 32 : index
    %c128_17 = arith.constant 128 : index
    %10 = vector.load %arg3[%c32_16, %c128_17] : memref<40x192xf32, #tpu.memory_space<vmem>>, vector<1x64xf32>
    %c0_18 = arith.constant 0 : index
    %c0_19 = arith.constant 0 : index
    %11 = vector.load %arg4[%c0_18, %c0_19] : memref<96x144xf32, #tpu.memory_space<vmem>>, vector<64x64xf32>
    %c0_20 = arith.constant 0 : index
    %c64 = arith.constant 64 : index
    %12 = vector.load %arg4[%c0_20, %c64] : memref<96x144xf32, #tpu.memory_space<vmem>>, vector<64x64xf32>
    %c0_21 = arith.constant 0 : index
    %c128_22 = arith.constant 128 : index
    %13 = vector.load %arg4[%c0_21, %c128_22] : memref<96x144xf32, #tpu.memory_space<vmem>>, vector<64x16xf32>
    %c64_23 = arith.constant 64 : index
    %c0_24 = arith.constant 0 : index
    %14 = vector.load %arg4[%c64_23, %c0_24] : memref<96x144xf32, #tpu.memory_space<vmem>>, vector<16x64xf32>
    %c80 = arith.constant 80 : index
    %c0_25 = arith.constant 0 : index
    %15 = vector.load %arg4[%c80, %c0_25] : memref<96x144xf32, #tpu.memory_space<vmem>>, vector<16x2xf32>
    %cst = arith.constant dense<0.000000e+00> : vector<16xf32>
    %16 = vector.multi_reduction <add>, %0, %cst [1] : vector<16x32xf32> to vector<16xf32>
    %17 = vector.shape_cast %16 : vector<16xf32> to vector<16x1xf32>
    %cst_26 = arith.constant 3.200000e+01 : f32
    %18 = vector.broadcast %cst_26 : f32 to vector<16x1xf32>
    %19 = arith.divf %17, %18 : vector<16x1xf32>
    %20 = vector.broadcast %19 : vector<16x1xf32> to vector<16x32xf32>
    %21 = arith.subf %0, %20 : vector<16x32xf32>
    %22 = arith.mulf %21, %21 : vector<16x32xf32>
    %cst_27 = arith.constant dense<0.000000e+00> : vector<16xf32>
    %23 = vector.multi_reduction <add>, %22, %cst_27 [1] : vector<16x32xf32> to vector<16xf32>
    %24 = vector.shape_cast %23 : vector<16xf32> to vector<16x1xf32>
    %cst_28 = arith.constant 3.200000e+01 : f32
    %25 = vector.broadcast %cst_28 : f32 to vector<16x1xf32>
    %26 = arith.divf %24, %25 : vector<16x1xf32>
    %cst_29 = arith.constant 9.99999974E-6 : f32
    %27 = vector.broadcast %cst_29 : f32 to vector<16x1xf32>
    %28 = arith.addf %26, %27 : vector<16x1xf32>
    %29 = math.rsqrt %28 : vector<16x1xf32>
    %30 = vector.broadcast %29 : vector<16x1xf32> to vector<16x32xf32>
    %31 = arith.mulf %21, %30 : vector<16x32xf32>
    %cst_30 = arith.constant dense<0.000000e+00> : vector<16x32xf32>
    %32 = tpu.matmul %31, %3, %cst_30 {dimension_numbers = #tpu.dot_dimension_numbers<[1], [0], [0], [1], [0, 0, 1, 1], [], []>} : vector<16x32xf32>, vector<32x32xf32>, vector<16x32xf32> -> vector<16x32xf32>
    %33 = vector.broadcast %7 : vector<1x32xf32> to vector<16x32xf32>
    %34 = arith.addf %32, %33 : vector<16x32xf32>
    %cst_31 = arith.constant dense<0.000000e+00> : vector<16x64xf32>
    %35 = tpu.matmul %1, %4, %cst_31 {dimension_numbers = #tpu.dot_dimension_numbers<[1], [0], [0], [1], [0, 0, 1, 1], [], []>} : vector<16x32xf32>, vector<32x64xf32>, vector<16x64xf32> -> vector<16x64xf32>
    %36 = vector.broadcast %8 : vector<1x64xf32> to vector<16x64xf32>
    %37 = arith.addf %35, %36 : vector<16x64xf32>
    %cst_32 = arith.constant dense<0.000000e+00> : vector<64x64xf32>
    %38 = tpu.matmul %13, %37, %cst_32 {dimension_numbers = #tpu.dot_dimension_numbers<[1], [0], [0], [1], [0, 0, 1, 1], [], []>} : vector<64x16xf32>, vector<16x64xf32>, vector<64x64xf32> -> vector<64x64xf32>
    %39 = arith.mulf %38, %11 : vector<64x64xf32>
    %40 = vector.extract_strided_slice %39 {offsets = [0, 0], sizes = [64, 32], strides = [1, 1]} : vector<64x64xf32> to vector<64x32xf32>
    %41 = vector.extract_strided_slice %39 {offsets = [0, 32], sizes = [64, 32], strides = [1, 1]} : vector<64x64xf32> to vector<64x32xf32>
    %cst_33 = arith.constant dense<0.000000e+00> : vector<16x64xf32>
    %42 = tpu.matmul %34, %40, %cst_33 {dimension_numbers = #tpu.dot_dimension_numbers<[1], [1], [0], [0], [0, 0, 1, 0], [], []>} : vector<16x32xf32>, vector<64x32xf32>, vector<16x64xf32> -> vector<16x64xf32>
    %43 = arith.addf %42, %14 : vector<16x64xf32>
    %cst_34 = arith.constant dense<0xFF800000> : vector<16xf32>
    %44 = vector.multi_reduction <maximumf>, %43, %cst_34 [1] : vector<16x64xf32> to vector<16xf32>
    %45 = vector.shape_cast %44 : vector<16xf32> to vector<16x1xf32>
    %46 = vector.broadcast %45 : vector<16x1xf32> to vector<16x64xf32>
    %47 = arith.subf %43, %46 : vector<16x64xf32>
    %48 = math.exp %47 : vector<16x64xf32>
    %cst_35 = arith.constant dense<0.000000e+00> : vector<16x64xf32>
    %49 = tpu.matmul %48, %12, %cst_35 {dimension_numbers = #tpu.dot_dimension_numbers<[1], [0], [0], [1], [0, 0, 1, 1], [], []>} : vector<16x64xf32>, vector<64x64xf32>, vector<16x64xf32> -> vector<16x64xf32>
    %cst_36 = arith.constant 1.000000e-30 : f32
    %50 = vector.broadcast %cst_36 : f32 to vector<16x64xf32>
    %51 = arith.maximumf %49, %50 : vector<16x64xf32>
    %52 = tpu.reciprocal %51 {approx = true} : vector<16x64xf32> -> vector<16x64xf32>
    %53 = arith.mulf %48, %52 : vector<16x64xf32>
    %cst_37 = arith.constant dense<0.000000e+00> : vector<16x32xf32>
    %54 = tpu.matmul %53, %41, %cst_37 {dimension_numbers = #tpu.dot_dimension_numbers<[1], [0], [0], [1], [0, 0, 1, 1], [], []>} : vector<16x64xf32>, vector<64x32xf32>, vector<16x32xf32> -> vector<16x32xf32>
    %cst_38 = arith.constant dense<0.000000e+00> : vector<16x32xf32>
    %55 = tpu.matmul %54, %5, %cst_38 {dimension_numbers = #tpu.dot_dimension_numbers<[1], [0], [0], [1], [0, 0, 1, 1], [], []>} : vector<16x32xf32>, vector<32x32xf32>, vector<16x32xf32> -> vector<16x32xf32>
    %56 = vector.broadcast %9 : vector<1x32xf32> to vector<16x32xf32>
    %57 = arith.addf %55, %56 : vector<16x32xf32>
    %cst_39 = arith.constant 0.000000e+00 : f32
    %58 = vector.broadcast %cst_39 : f32 to vector<2x32xf32>
    %59 = arith.maximumf %2, %58 : vector<2x32xf32>
    %60 = math.absf %2 : vector<2x32xf32>
    %cst_40 = arith.constant 0.000000e+00 : f32
    %61 = vector.broadcast %cst_40 : f32 to vector<2x32xf32>
    %62 = arith.subf %61, %60 : vector<2x32xf32>
    %63 = math.exp %62 : vector<2x32xf32>
    %64 = math.log1p %63 : vector<2x32xf32>
    %65 = arith.addf %59, %64 : vector<2x32xf32>
    %66 = math.tanh %65 : vector<2x32xf32>
    %67 = arith.mulf %2, %66 : vector<2x32xf32>
    %cst_41 = arith.constant dense<0.000000e+00> : vector<2x64xf32>
    %68 = tpu.matmul %67, %6, %cst_41 {dimension_numbers = #tpu.dot_dimension_numbers<[1], [0], [0], [1], [0, 0, 1, 1], [], []>} : vector<2x32xf32>, vector<32x64xf32>, vector<2x64xf32> -> vector<2x64xf32>
    %69 = vector.broadcast %10 : vector<1x64xf32> to vector<2x64xf32>
    %70 = arith.addf %68, %69 : vector<2x64xf32>
    %cst_42 = arith.constant dense<0.000000e+00> : vector<16x64xf32>
    %71 = tpu.matmul %15, %70, %cst_42 {dimension_numbers = #tpu.dot_dimension_numbers<[1], [0], [0], [1], [0, 0, 1, 1], [], []>} : vector<16x2xf32>, vector<2x64xf32>, vector<16x64xf32> -> vector<16x64xf32>
    %72 = vector.extract_strided_slice %71 {offsets = [0, 0], sizes = [16, 32], strides = [1, 1]} : vector<16x64xf32> to vector<16x32xf32>
    %73 = vector.extract_strided_slice %71 {offsets = [0, 32], sizes = [16, 32], strides = [1, 1]} : vector<16x64xf32> to vector<16x32xf32>
    %74 = arith.mulf %72, %57 : vector<16x32xf32>
    %75 = arith.addf %0, %74 : vector<16x32xf32>
    %76 = arith.addf %75, %73 : vector<16x32xf32>
    %c0_43 = arith.constant 0 : index
    %c0_44 = arith.constant 0 : index
    %77 = vector.load %arg5[%c0_43, %c0_44] : memref<16x32xf32, #tpu.memory_space<vmem>>, vector<16x32xf32>
    tpu.vector_store %arg5[%c0_43, %c0_44], %76 {strides = array<i32>} : memref<16x32xf32, #tpu.memory_space<vmem>>, vector<16x32xf32>,
    return
  }
}

</mosaic_0001>

<bundles_post_ra>
// kernel: tpu_custom_call.1
= control target key start
LH: loop header
LB: loop body
LE: loop exit
PB: predicated region body
PF: predicated region fallthrough
CT: control target
= control target key end

     0   :  { %vm56_vm0 = vcmask 261120   ;;  %s743_s24 = smov 96   ;;  %s963_s0 = inlined_call_operand.vmem [shape: f32[16,32], index: 0, kind: input, shape index: {}]   ;;  %s964_s1 = inlined_call_operand.vmem [shape: f32[16,32], index: 1, kind: input, shape index: {}]   ;;  %s965_s2 = inlined_call_operand.vmem [shape: f32[2,32], index: 2, kind: input, shape index: {}]   ;;  %s966_s3 = inlined_call_operand.vmem [shape: f32[40,192], index: 3, kind: input, shape index: {}]   ;;  %s967_s4 = inlined_call_operand.vmem [shape: f32[96,144], index: 4, kind: input, shape index: {}]   ;;  %s968_s5 = inlined_call_operand.hbm [shape: f32[16,32], index: 5, kind: output, shape index: {}]  }
   0x1   :  { %v783_v0 = vld [vmem:[%s966_s3 + $0x40] ss:$0 sm:$0xff]  ;;  %v788_v1 = vld [vmem:[%s963_s0 + $0x8] sm:$0xff]  ;;  %v29_v4 = vld [vmem:[%s966_s3 + $0x30] sm:$0xff] }
   0x2   :  { %v28_v2 = vld [vmem:[%s966_s3 + $0x20] sm:$0xff]  ;;  %154 = vrot.lane.b32.xlu1 %v783_v0, %s743_s24  ;;  %v60_v3 = vsel %vm56_vm0, %v788_v1, 0.0  ;;  %126 = vmatpush.msra.mxu0 %v29_v4 }
   0x3   :  { %61 = vadd.xlane.f32.xlu2 %v60_v3  ;;  %v800_v5 = vpack.i.bf16 %v28_v2, %v29_v4 }
   0x4   :  { %10 = vsyncpa [#allocation3], 0  ;;  %127 = vmatpush.msra.mxu0 %v28_v2  ;;  %v26_v6 = vld [vmem:[%s966_s3] sm:$0xff]  ;;  %v27_v7 = vld [vmem:[%s966_s3 + $0x10] sm:$0xff]  ;;  %v744_v11 = vmov 32.0   ;;  %vm186_vm2 = vcmask 130048  }
   0x5   :  { %638 = vrot.lane.b32.xlu0 %v800_v5, %s743_s24  ;;  %v810_v8 = vpack.i.bf16 %v26_v6, %v27_v7  ;;  %v817_v9 = vld [vmem:[%s963_s0] sm:$0xff]  ;;  %697 = vrcp.f32 %v744_v11  ;;  %v24_v30 = vld [vmem:[%s964_s1 + $0x8] sm:$0xff]  ;;  %v45_v45 = vld [vmem:[%s967_s4 + $0x18] sm:$0xff]  ;;  %s745_s6 = smov 64   ;;  %vm313_vm9 = vcmask 523264   ;;  %s746_s26 = smov 32  }
   0x6   :  { %128 = vmatpush.msra.mxu0 %v27_v7  ;;  %v57_v10 = vsel %vm56_vm0, %v817_v9, 0.0  ;;  %v23_v29 = vld [vmem:[%s964_s1] sm:$0xff]  ;;  %v44_v41 = vld [vmem:[%s967_s4 + $0x8] sm:$0xff]  ;;  %v47_v53 = vld [vmem:[%s967_s4 + $0x38] sm:$0xff]  ;;  %vm537_vm11 = vcmask 1041408   ;;  %vm530_vm12 = vcmask 15360  }
   0x7   :  { %v46_v49 = vld [vmem:[%s967_s4 + $0x28] sm:$0xff]  ;;  %v49_v4 = vld [vmem:[%s967_s4 + $0x58] sm:$0xff]  ;;  %s586_s13 = sshll.u32 %s968_s5, 4  ;;  %s749_s14 = smov 8   ;;  %s587_s13 = int_to_ptr.hbm [resolvable:$true] %s586_s13 }
   0x8   :  { %129 = vmatpush.msra.mxu0 %v26_v6  ;;  %v48_v60 = vld [vmem:[%s967_s4 + $0x48] sm:$0xff]  ;;  %v51_v11 = vld [vmem:[%s967_s4 + $0x78] sm:$0xff] }
   0xb   :  { %v698_v12 = vpop.eup %697 }
   0xc   :  { %v64_v13 = vmul.f32 32.0, %v698_v12  ;;  %vm68_vm1 = vweird.f32 %v698_v12 }
   0xd   :  { %643 = vrot.lane.b32.xlu0 %v810_v8, %s743_s24 }
   0xe   :  { %v65_v14 = vsub.f32 1.0, %v64_v13  ;;  %v39_v13 = vld [vmem:[%s967_s4 + $0x30] sm:$0xff] }
  0x10   :  { %v66_v15 = vmul.f32 %v698_v12, %v65_v14 }
  0x12   :  { %v67_v16 = vadd.f32 %v698_v12, %v66_v15  ;;  %v36_v15 = vld [vmem:[%s967_s4] sm:$0xff] }
  0x14   :  { %v69_v17 = vsel %vm68_vm1, %v698_v12, %v67_v16  ;;  %v38_v12 = vld [vmem:[%s967_s4 + $0x20] sm:$0xff]  ;;  %v37_v16 = vld [vmem:[%s967_s4 + $0x10] sm:$0xff] }
  0x15   :  { %v657_v14 = vpack.i.bf16 %v38_v12, %v39_v13 }
  0x2c   :  { %58 = vadd.xlane.f32.xlu1 %v57_v10  ;;  %v50_v10 = vld [vmem:[%s967_s4 + $0x68] sm:$0xff] }
  0x74   :  { %v155_v31 = vpop.permute.xlu1 %154 }
  0x76   :  { %v62_v18 = vpop.xlane.xlu2 %61 }
  0x77   :  { %v639_v19 = vpop.permute.xlu0 %638  ;;  %v71_v20 = vmul.f32 %v69_v17, %v62_v18 }
  0x78   :  { %v640_v21 = vunpack.i.l.bf16 %v639_v19  ;;  %v641_v23 = vunpack.i.h.bf16 %v639_v19  ;;  %v40_v19 = vld [vmem:[%s967_s4 + $0x40] sm:$0xff] }
  0x79   :  { %v822_v22 = vsub.f32 %v788_v1, %v71_v20  ;;  %v41_v20 = vld [vmem:[%s967_s4 + $0x50] sm:$0xff] }
  0x7a   :  { %175 = vmatpush.msra.mxu1 %v640_v21  ;;  %v652_v21 = vpack.i.bf16 %v40_v19, %v41_v20 }
  0x7b   :  { %v75_v24 = vmul.f32 %v822_v22, %v822_v22 }
  0x7c   :  { %176 = vmatpush.msra.mxu1 %v641_v23  ;;  %653 = vrot.lane.b32.xlu1 %v652_v21, %s745_s6 }
  0x7d   :  { %v79_v25 = vsel %vm56_vm0, %v75_v24, 0.0  ;;  %v42_v24 = vld [vmem:[%s967_s4 + $0x60] sm:$0xff] }
  0x7e   :  { %80 = vadd.xlane.f32.xlu0 %v79_v25  ;;  %v43_v25 = vld [vmem:[%s967_s4 + $0x70] sm:$0xff] }
  0x7f   :  { %v644_v26 = vpop.permute.xlu0 %643 }
  0x80   :  { %v645_v27 = vunpack.i.l.bf16 %v644_v26  ;;  %v646_v28 = vunpack.i.h.bf16 %v644_v26  ;;  %v647_v26 = vpack.i.bf16 %v42_v24, %v43_v25 }
  0x82   :  { %177 = vmatpush.msra.mxu1 %v645_v27 }
  0x84   :  { %178 = vmatpush.msra.mxu1 %v646_v28 }
  0x85   :  { %600 = vmatmul.msk.f32.vlgmr.msra.gmra.mxu1 %vm56_vm0, %v23_v29 }
  0x8d   :  { %601 = vmatmul.msk.f32.gmra.mxu1 %vm56_vm0, %v24_v30 }
  0x92   :  { %658 = vrot.lane.b32.xlu0 %v657_v14, %s745_s6 }
  0x9f   :  { %v59_v32 = vpop.xlane.xlu1 %58 }
  0xa0   :  { %v70_v33 = vmul.f32 %v69_v17, %v59_v32 }
  0xa2   :  { %v72_v34 = vsub.f32 %v817_v9, %v70_v33 }
  0xa4   :  { %v74_v35 = vmul.f32 %v72_v34, %v72_v34 }
  0xa6   :  { %v76_v36 = vsel %vm56_vm0, %v74_v35, 0.0 }
  0xa7   :  { %77 = vadd.xlane.f32.xlu2 %v76_v36 }
  0xbf   :  { %648 = vrot.lane.b32.xlu2 %v647_v26, %s745_s6 }
  0xf1   :  { %v81_v42 = vpop.xlane.xlu0 %80 }
  0xf2   :  { %v83_v43 = vmul.f32 %v81_v42, %v69_v17 }
  0xf4   :  { %v85_v44 = vadd.f32 1e-05, %v83_v43 }
  0xf6   :  { %699 = vrsqrt.f32 %v85_v44  ;;  %vm102_vm6 = vweird.f32 %v85_v44 }
  0xfc   :  { %v700_v50 = vpop.eup %699 }
  0xfd   :  { %v97_v51 = vmul.f32 %v700_v50, %v85_v44  ;;  %vm103_vm7 = vweird.f32 %v700_v50 }
  0xfe   :  { %vm104_vm8 = vmor %vm102_vm6, %vm103_vm7 }
  0xff   :  { %v98_v54 = vmul.f32 %v700_v50, %v97_v51 }
 0x101   :  { %v99_v57 = vmul.f32 0.5, %v98_v54 }
 0x102   :  { %v180_v37 = vpop.f32.mrf.mxu1 }
 0x103   :  { %v181_v40 = vadd.f32 %v180_v37, %v155_v31  ;;  %v100_v61 = vsub.f32 1.5, %v99_v57 }
 0x104   :  { %v659_v57 = vpop.permute.xlu0 %658 }
 0x105   :  { %v101_v3 = vmul.f32 %v700_v50, %v100_v61 }
 0x107   :  { %v105_v6 = vsel %vm104_vm8, %v700_v50, %v101_v3 }
 0x108   :  { %v107_v7 = vmul.f32 %v105_v6, %v822_v22 }
 0x10a   :  { %v183_v38 = vpop.f32.mrf.mxu1 }
 0x10b   :  { %v184_v39 = vadd.f32 %v183_v38, %v155_v31 }
 0x10d   :  { %225 = vmatpush.msra.mxu2 %v184_v39 }
 0x10f   :  { %226 = vmatpush.msra.mxu2 %v181_v40 }
 0x110   :  { %602 = vmatmul.msk.f32.vlgmr.msra.gmra.mxu2 %vm186_vm2, %v44_v41 }
 0x118   :  { %603 = vmatmul.msk.f32.gmra.mxu2 %vm186_vm2, %v45_v45 }
 0x11a   :  { %v78_v46 = vpop.xlane.xlu2 %77 }
 0x11b   :  { %v82_v47 = vmul.f32 %v78_v46, %v69_v17  ;;  %v662_v17 = vpack.i.bf16 %v36_v15, %v37_v16 }
 0x11d   :  { %v84_v48 = vadd.f32 1e-05, %v82_v47  ;;  %663 = vrot.lane.b32.xlu0 %v662_v17, %s745_s6 }
 0x11f   :  { %701 = vrsqrt.f32 %v84_v48  ;;  %vm92_vm3 = vweird.f32 %v84_v48 }
 0x120   :  { %604 = vmatmul.msk.f32.gmra.mxu2 %vm186_vm2, %v46_v49  ;;  %v654_v49 = vpop.permute.xlu1 %653 }
 0x125   :  { %v702_v52 = vpop.eup %701 }
 0x126   :  { %v87_v55 = vmul.f32 %v702_v52, %v84_v48  ;;  %vm93_vm4 = vweird.f32 %v702_v52  ;;  %v649_v48 = vpop.permute.xlu2 %648 }
 0x127   :  { %vm94_vm5 = vmor %vm92_vm3, %vm93_vm4  ;;  %v650_v50 = vunpack.i.l.bf16 %v649_v48  ;;  %v651_v51 = vunpack.i.h.bf16 %v649_v48 }
 0x128   :  { %v88_v56 = vmul.f32 %v702_v52, %v87_v55  ;;  %605 = vmatmul.msk.f32.gmra.mxu2 %vm186_vm2, %v47_v53  ;;  %v655_v53 = vunpack.i.l.bf16 %v654_v49 }
 0x129   :  { %372 = vmatpush.msrb.mxu0 %v650_v50 }
 0x12a   :  { %v89_v58 = vmul.f32 0.5, %v88_v56  ;;  %v656_v56 = vunpack.i.h.bf16 %v654_v49 }
 0x12b   :  { %373 = vmatpush.msrb.mxu0 %v651_v51 }
 0x12c   :  { %v90_v59 = vsub.f32 1.5, %v89_v58 }
 0x12d   :  { %374 = vmatpush.msrb.mxu0 %v655_v53 }
 0x12e   :  { %v91_v62 = vmul.f32 %v702_v52, %v90_v59  ;;  %v660_v59 = vunpack.i.l.bf16 %v659_v57 }
 0x12f   :  { %375 = vmatpush.msrb.mxu0 %v656_v56 }
 0x130   :  { %606 = vmatmul.msk.f32.gmra.mxu2 %vm186_vm2, %v48_v60  ;;  %v95_v63 = vsel %vm94_vm5, %v702_v52, %v91_v62  ;;  %v52_v52 = vld [vmem:[%s967_s4 + $0x80] sm:$0xff]  ;;  %v53_v60 = vld [vmem:[%s967_s4 + $0x90] sm:$0xff] }
 0x131   :  { %v106_v2 = vmul.f32 %v95_v63, %v72_v34  ;;  %376 = vmatpush.msrb.mxu0 %v660_v59 }
 0x133   :  { %598 = vmatmul.msk.f32.vlgmr.msra.gmra.mxu0 %vm56_vm0, %v106_v2  ;;  %v661_v2 = vunpack.i.h.bf16 %v659_v57 }
 0x135   :  { %377 = vmatpush.msrb.mxu0 %v661_v2 }
 0x138   :  { %607 = vmatmul.msk.f32.gmra.mxu2 %vm186_vm2, %v49_v4 }
 0x13b   :  { %599 = vmatmul.msk.f32.gmra.mxu0 %vm56_vm0, %v107_v7 }
 0x140   :  { %608 = vmatmul.msk.f32.gmra.mxu2 %vm186_vm2, %v50_v10 }
 0x148   :  { %609 = vmatmul.msk.f32.gmra.mxu2 %vm186_vm2, %v51_v11 }
 0x18f   :  { %v664_v3 = vpop.permute.xlu0 %663 }
 0x190   :  { %v665_v4 = vunpack.i.l.bf16 %v664_v3  ;;  %v666_v6 = vunpack.i.h.bf16 %v664_v3 }
 0x192   :  { %378 = vmatpush.msrb.mxu0 %v665_v4  ;;  %v54_v4 = vld [vmem:[%s967_s4 + $0xa0] sm:$0xff] }
 0x193   :  { %v228_v18 = vpop.f32.mrf.mxu2 }
 0x194   :  { %v252_v39 = vmul.f32 %v228_v18, %v36_v15  ;;  %379 = vmatpush.msrb.mxu0 %v666_v6  ;;  %v55_v6 = vld [vmem:[%s967_s4 + $0xb0] sm:$0xff] }
 0x19b   :  { %v231_v22 = vpop.f32.mrf.mxu2 }
 0x19c   :  { %v253_v37 = vmul.f32 %v231_v22, %v37_v16 }
 0x19e   :  { %v682_v42 = vpack.i.bf16 %v252_v39, %v253_v37 }
 0x1a3   :  { %v234_v23 = vpop.f32.mrf.mxu2 }
 0x1a4   :  { %v254_v35 = vmul.f32 %v234_v23, %v38_v12 }
 0x1ab   :  { %v237_v27 = vpop.f32.mrf.mxu2 }
 0x1ac   :  { %v255_v33 = vmul.f32 %v237_v27, %v39_v13 }
 0x1ae   :  { %v677_v36 = vpack.i.bf16 %v254_v35, %v255_v33 }
 0x1b0   :  { %v131_v44 = vpop.f32.mrf.mxu0 }
 0x1b1   :  { %v132_v45 = vadd.f32 %v131_v44, %v783_v0 }
 0x1b3   :  { %v240_v28 = vpop.f32.mrf.mxu2 }
 0x1b4   :  { %v256_v30 = vmul.f32 %v240_v28, %v40_v19 }
 0x1b8   :  { %v134_v46 = vpop.f32.mrf.mxu0 }
 0x1b9   :  { %v135_v47 = vadd.f32 %v134_v46, %v783_v0 }
 0x1bb   :  { %v243_v29 = vpop.f32.mrf.mxu2 }
 0x1bc   :  { %v257_v31 = vmul.f32 %v243_v29, %v41_v20  ;;  %v25_v29 = vld [vmem:[%s965_s2] sm:$0x3] }
 0x1bd   :  { %v490_v46 = vmax.f32 %v25_v29, 0.0 }
 0x1be   :  { %v672_v32 = vpack.i.bf16 %v256_v30, %v257_v31 }
 0x1c0   :  { %673 = vrot.lane.b32.xlu0 %v672_v32, %s743_s24 }
 0x1c3   :  { %v246_v34 = vpop.f32.mrf.mxu2 }
 0x1c4   :  { %v258_v40 = vmul.f32 %v246_v34, %v42_v24 }
 0x1c8   :  { %678 = vrot.lane.b32.xlu0 %v677_v36, %s743_s24  ;;  %v31_v36 = vld [vmem:[%s966_s3 + $0x18] sm:$0xff] }
 0x1cb   :  { %v249_v38 = vpop.f32.mrf.mxu2 }
 0x1cc   :  { %v259_v41 = vmul.f32 %v249_v38, %v43_v25 }
 0x1ce   :  { %v667_v43 = vpack.i.bf16 %v258_v40, %v259_v41  ;;  %610 = vmatpush.xpose.msk.msra.mxu3 %vm56_vm0, %v259_v41 }
 0x1d0   :  { %683 = vrot.lane.b32.xlu0 %v682_v42, %s743_s24 }
 0x1d2   :  { %611 = vmatpush.xpose.msk.msra.mxu3 %vm56_vm0, %v258_v40 }
 0x1d6   :  { %612 = vmatpush.xpose.msk.msra.mxu3 %vm56_vm0, %v257_v31 }
 0x1d8   :  { %693 = vrot.lane.b32.xlu0 %v810_v8, %s746_s26 }
 0x1da   :  { %613 = vmatpush.xpose.msk.msra.mxu3 %vm56_vm0, %v256_v30  ;;  %v491_v30 = vand.u32 2147483647, %v25_v29 }
 0x1dc   :  { %v492_v31 = vsub.f32 0.0, %v491_v30 }
 0x1de   :  { %614 = vmatpush.xpose.msk.msra.mxu3 %vm56_vm0, %v255_v33  ;;  %v493_v32 = vmul.f32 1.442695, %v492_v31  ;;  %v33_v33 = vld [vmem:[%s966_s3 + $0x38] sm:$0xff] }
 0x1e2   :  { %615 = vmatpush.xpose.msk.msra.mxu3 %vm56_vm0, %v254_v35  ;;  %v32_v35 = vld [vmem:[%s966_s3 + $0x28] sm:$0xff] }
 0x1e6   :  { %616 = vmatpush.xpose.msk.msra.mxu3 %vm56_vm0, %v253_v37  ;;  %v30_v37 = vld [vmem:[%s966_s3 + $0x8] sm:$0xff] }
 0x1ea   :  { %617 = vmatpush.xpose.msk.msra.mxu3 %vm56_vm0, %v252_v39 }
 0x1ed   :  { %618 = vmatmul.msk.f32.vlgmr.msra.gmra.mxu3 %vm56_vm0, %v132_v45 }
 0x1f5   :  { %619 = vmatmul.msk.f32.gmra.mxu3 %vm56_vm0, %v135_v47 }
 0x232   :  { %v674_v7 = vpop.permute.xlu0 %673 }
 0x233   :  { %v675_v21 = vunpack.i.l.bf16 %v674_v7  ;;  %v676_v22 = vunpack.i.h.bf16 %v674_v7 }
 0x23a   :  { %v679_v13 = vpop.permute.xlu0 %678 }
 0x23b   :  { %v680_v23 = vunpack.i.l.bf16 %v679_v13  ;;  %v681_v26 = vunpack.i.h.bf16 %v679_v13 }
 0x242   :  { %v684_v24 = vpop.permute.xlu0 %683 }
 0x243   :  { %v685_v27 = vunpack.i.l.bf16 %v684_v24  ;;  %v686_v28 = vunpack.i.h.bf16 %v684_v24 }
 0x270   :  { %v307_v54 = vpop.f32.mrf.mxu3 }
 0x271   :  { %v308_v55 = vadd.f32 %v307_v54, %v52_v52 }
 0x273   :  { %v314_v58 = vsel %vm313_vm9, %v308_v55, -inf }
 0x274   :  { %315 = vmax.xlane.f32.xlu2 %v314_v58  ;;  %v694_v58 = vpop.permute.xlu0 %693 }
 0x275   :  { %v696_v59 = vunpack.i.h.bf16 %v694_v58 }
 0x278   :  { %v310_v61 = vpop.f32.mrf.mxu3 }
 0x279   :  { %v311_v62 = vadd.f32 %v310_v61, %v53_v60  ;;  %v695_v60 = vunpack.i.l.bf16 %v694_v58 }
 0x27b   :  { %v317_v63 = vsel %vm313_vm9, %v311_v62, -inf }
 0x27c   :  { %318 = vmax.xlane.f32.xlu1 %v317_v63  ;;  %v35_v63 = vld [vmem:[%s966_s3 + $0x48] ss:$0 sm:$0xff]  ;;  %s747_s3 = smov [#allocation2]  }
 0x27d   :  { %s584_s4 = sshll.u32 %s747_s3, 4  ;;  %s585_s4 = int_to_ptr.vmem [resolvable:$true] %s584_s4 }
 0x28c   :  { %668 = vrot.lane.b32.xlu2 %v667_v43, %s743_s24 }
 0x294   :  { %688 = vrot.lane.b32.xlu2 %v800_v5, %s746_s26 }
 0x29c   :  { %458 = vrot.lane.b32.xlu2 %v783_v0, %s746_s26 }
 0x2e7   :  { %v316_v10 = vpop.xlane.xlu2 %315 }
 0x2e8   :  { %v320_v11 = vsub.f32 %v308_v55, %v316_v10 }
 0x2ea   :  { %v322_v12 = vmul.f32 1.442695, %v320_v11 }
 0x2ec   :  { %703 = vpow2.f32 %v322_v12 }
 0x2ef   :  { %v669_v14 = vpop.permute.xlu2 %668  ;;  %v319_v15 = vpop.xlane.xlu1 %318 }
 0x2f0   :  { %v321_v16 = vsub.f32 %v311_v62, %v319_v15  ;;  %v670_v17 = vunpack.i.l.bf16 %v669_v14  ;;  %v671_v20 = vunpack.i.h.bf16 %v669_v14 }
 0x2f2   :  { %v704_v18 = vpop.eup %703  ;;  %v324_v19 = vmul.f32 1.442695, %v321_v16  ;;  %431 = vmatpush.msrb.mxu1 %v670_v17 }
 0x2f3   :  { %620 = vmatmul.msk.f32.vlgmr.msrb.gmra.mxu0 %vm313_vm9, %v704_v18 }
 0x2f4   :  { %705 = vpow2.f32 %v324_v19  ;;  %432 = vmatpush.msrb.mxu1 %v671_v20 }
 0x2f5   :  { %707 = vpow2.f32 %v493_v32 }
 0x2f6   :  { %433 = vmatpush.msrb.mxu1 %v675_v21 }
 0x2f7   :  { %v689_v0 = vpop.permute.xlu2 %688 }
 0x2f8   :  { %434 = vmatpush.msrb.mxu1 %v676_v22  ;;  %v691_v56 = vunpack.i.h.bf16 %v689_v0  ;;  %v690_v57 = vunpack.i.l.bf16 %v689_v0 }
 0x2fa   :  { %v706_v25 = vpop.eup %705  ;;  %435 = vmatpush.msrb.mxu1 %v680_v23  ;;  %479 = vmatpush.msra.mxu0 %v690_v57 }
 0x2fb   :  { %621 = vmatmul.msk.f32.gmra.mxu0 %vm313_vm9, %v706_v25  ;;  %v708_v34 = vpop.eup %707 }
 0x2fc   :  { %436 = vmatpush.msrb.mxu1 %v681_v26  ;;  %v495_v38 = vadd.f32 1.0, %v708_v34  ;;  %v498_v8 = vmul.f32 -0.5, %v708_v34  ;;  %v501_v43 = vand.u32 2147483647, %v708_v34  ;;  %480 = vmatpush.msra.mxu0 %v691_v56 }
 0x2fe   :  { %437 = vmatpush.msrb.mxu1 %v685_v27  ;;  %709 = vlog2.f32 %v495_v38  ;;  %v499_v40 = vadd.f32 1.0, %v498_v8  ;;  %vm502_vm10 = vcmp.lt.f32.partialorder %v501_v43, 0.0004427343  ;;  %481 = vmatpush.msra.mxu0 %v695_v60 }
 0x2ff   :  { %v459_v12 = vpop.permute.xlu2 %458 }
 0x300   :  { %438 = vmatpush.msrb.mxu1 %v686_v28  ;;  %v500_v45 = vmul.f32 %v708_v34, %v499_v40  ;;  %482 = vmatpush.msra.mxu0 %v696_v59 }
 0x302   :  { %522 = vmatpush.msra.mxu1 %v33_v33 }
 0x304   :  { %523 = vmatpush.msra.mxu1 %v32_v35  ;;  %v710_v41 = vpop.eup %709 }
 0x305   :  { %v497_v44 = vmul.f32 0.6931472, %v710_v41 }
 0x306   :  { %524 = vmatpush.msra.mxu1 %v31_v36 }
 0x307   :  { %v503_v48 = vsel %vm502_vm10, %v500_v45, %v497_v44 }
 0x308   :  { %525 = vmatpush.msra.mxu1 %v30_v37  ;;  %v504_v52 = vadd.f32 %v503_v48, %v490_v46 }
 0x370   :  { %v381_v39 = vpop.f32.mrf.mxu0 }
 0x371   :  { %v387_v42 = vmax.f32 %v381_v39, 1e-30 }
 0x373   :  { %711 = vrcp.f32 %v387_v42 }
 0x378   :  { %v384_v47 = vpop.f32.mrf.mxu0 }
 0x379   :  { %v712_v49 = vpop.eup %711  ;;  %v388_v50 = vmax.f32 %v384_v47, 1e-30 }
 0x37a   :  { %v391_v51 = vmul.f32 %v712_v49, %v704_v18 }
 0x37b   :  { %713 = vrcp.f32 %v388_v50 }
 0x37c   :  { %622 = vmatmul.msk.f32.vlgmr.msrb.gmra.mxu1 %vm313_vm9, %v391_v51  ;;  %715 = vtanh.f32 %v504_v52 }
 0x381   :  { %v714_v5 = vpop.eup %713 }
 0x382   :  { %v392_v53 = vmul.f32 %v714_v5, %v706_v25  ;;  %v716_v54 = vpop.eup %715 }
 0x383   :  { %v506_v55 = vmul.f32 %v716_v54, %v25_v29 }
 0x384   :  { %623 = vmatmul.msk.f32.gmra.mxu1 %vm313_vm9, %v392_v53 }
 0x38c   :  { %626 = vmatmul.msk.f32.vlgmr.msra.gmra.mxu1 %vm56_vm0, %v506_v55 }
 0x3f9   :  { %v440_v61 = vpop.f32.mrf.mxu1 }
 0x3fa   :  { %624 = vmatmul.msk.f32.vlgmr.msra.gmra.mxu0 %vm56_vm0, %v440_v61 }
 0x401   :  { %v443_v62 = vpop.f32.mrf.mxu1 }
 0x402   :  { %625 = vmatmul.msk.f32.gmra.mxu0 %vm56_vm0, %v443_v62 }
 0x409   :  { %v527_v2 = vpop.f32.mrf.mxu1 }
 0x40a   :  { %v528_v3 = vadd.f32 %v527_v2, %v35_v63 }
 0x40c   :  { %627 = vmatpush.msk.msrb.mxu1 %vm537_vm11, %v528_v3 }
 0x40d   :  { %628 = vmatmul.msk.f32.vlgmr.msrb.gmra.mxu1 %vm530_vm12, %v54_v4 }
 0x415   :  { %629 = vmatmul.msk.f32.gmra.mxu1 %vm530_vm12, %v55_v6 }
 0x477   :  { %v484_v11 = vpop.f32.mrf.mxu0 }
 0x478   :  { %v485_v13 = vadd.f32 %v484_v11, %v459_v12 }
 0x47f   :  { %v487_v15 = vpop.f32.mrf.mxu0 }
 0x480   :  { %v488_v18 = vadd.f32 %v487_v15, %v459_v12 }
 0x48a   :  { %v558_v7 = vpop.f32.mrf.mxu1 }
 0x48b   :  { %570 = vrot.lane.b32.xlu1 %v558_v7, %s743_s24  ;;  %v564_v14 = vmul.f32 %v558_v7, %v485_v13 }
 0x48d   :  { %v566_v16 = vadd.f32 %v564_v14, %v817_v9 }
 0x492   :  { %v561_v10 = vpop.f32.mrf.mxu1 }
 0x493   :  { %572 = vrot.lane.b32.xlu0 %v561_v10, %s743_s24  ;;  %v565_v20 = vmul.f32 %v561_v10, %v488_v18  ;;  %s748_s24 = smov 128  }
 0x495   :  { %v567_v21 = vadd.f32 %v565_v20, %v788_v1 }
 0x4fd   :  { %v571_v17 = vpop.permute.xlu1 %570 }
 0x4fe   :  { %v576_v19 = vadd.f32 %v571_v17, %v566_v16 }
 0x500   :  { %578 = vst.msk [vmem:[#allocation2] sm:$0xff] %vm56_vm0, %v576_v19 }
 0x505   :  { %v573_v22 = vpop.permute.xlu0 %572 }
 0x506   :  { %v577_v23 = vadd.f32 %v573_v22, %v567_v21 }
 0x508   :  { %579 = vst.msk [vmem:[#allocation2 + $0x8] sm:$0xff] %vm56_vm0, %v577_v23 }
 0x509   :  { %592 = dma.vmem_to_hbm [thread:$0]  %s585_s4, 256, %s587_s13, [#allocation3], %s748_s24, %s748_s24, %s749_s14  }
 0x50a   :  { %741 = dma.done.wait [#allocation3], 256  }
 0x50b   :  { %742 = vsyncadd [#allocation3], 4294967040 }
 0x50c   :  { %597 = vsyncpa [#allocation3], 1 }

</bundles_post_ra>
